<compile_context>
chip_gen: v7x
topology: tpu7x:2x2x1
jax: 0.10.0
libtpu: 0.0.40
codegen_flags: <defaults>
</compile_context>

<pallas_src>
import functools

import jax
import jax.numpy as jnp
from jax.experimental import pallas as pl
from jax.experimental.pallas import tpu as pltpu


def _modified_kl_kernel(pred_ref, tgt_ref, w_ref, mask_ref, out_ref, *,
                        rows_total, block_rows, compute_dtype, use_mxu, ragged):
    pred = pred_ref[...].astype(compute_dtype)            # (TR, C)
    tgt = tgt_ref[...].astype(compute_dtype)              # (TR, C)
    prod = pred * tgt                                      # packed bf16 on v6e+/bf16

    if use_mxu:
        # Weighted class reduction on the MXU: w_ref is (C, 128) with -weight in
        # lane 0 and zeros elsewhere -> lane 0 of rowp is the weighted row sum,
        # all other lanes are exactly 0, so summing the whole block is correct.
        rowp = jnp.dot(prod, w_ref[...], preferred_element_type=jnp.float32)  # (TR,128)
    else:
        # f32 VPU path (f32 inputs, or chips without a bf16 VPU).
        rowp = jnp.sum(prod * w_ref[...], axis=1, keepdims=True)              # (TR,1)

    rowp = rowp * mask_ref[...]                            # per-row mask, f32 (TR,1) bcast

    def _store(partial):
        # Lane-dense splat store; wrapper reads partials[:, 0, 0].
        out_ref[...] = jnp.full((1, 8, 128), partial, jnp.float32)

    if not ragged:
        _store(jnp.sum(rowp))
    else:
        i = pl.program_id(0)
        is_last = i == pl.num_programs(0) - 1

        @pl.when(jnp.logical_not(is_last))
        def _():
            _store(jnp.sum(rowp))

        @pl.when(is_last)
        def _():
            # Zero out-of-bounds rows with a select so stale/NaN buffer contents
            # of the ragged last tile cannot leak into the sum.
            rid = jax.lax.broadcasted_iota(jnp.int32, rowp.shape, 0) + i * block_rows
            _store(jnp.sum(jnp.where(rid < rows_total, rowp, 0.0)))


def _device_kind():
    try:
        return jax.devices()[0].device_kind.lower()
    except Exception:
        return ""


def _vmem_capacity_bytes():
    try:
        return int(pltpu.get_tpu_info().vmem_capacity_bytes)
    except Exception:
        return 64 * 1024 * 1024        # conservative fallback (v7x-sized VMEM)


def modified_kl(pred_log_probs, target_probs, self_supervision_mask, weight, *,
                block_rows=None):
    """Pallas implementation of ModifiedKL.forward. Returns a scalar f32."""
    B, N, C = pred_log_probs.shape
    R = B * N

    # Free, contiguous reshapes; big streams keep their native dtype in HBM.
    pred = pred_log_probs.reshape(R, C)
    tgt = target_probs.reshape(R, C)
    mask = self_supervision_mask.reshape(R, 1).astype(jnp.float32)   # tiny stream
    w_neg = -jnp.asarray(weight, jnp.float32).reshape(-1)            # fold negation

    kind = _device_kind()
    vmem_cap = _vmem_capacity_bytes()

    # bf16 packed products + MXU weighted reduction only where it pays off
    # (bf16 streams, bf16-capable VPU, and a weight-column that stays small).
    in_dtype = jnp.promote_types(pred.dtype, tgt.dtype)
    bf16_vpu = ("v6" in kind) or ("v7" in kind) or ("7x" in kind)
    use_mxu = bool(in_dtype == jnp.bfloat16) and bf16_vpu and (C <= 16384)
    compute_dtype = jnp.bfloat16 if use_mxu else jnp.float32

    # Byte-based, dtype-aware row tile: ~8 MiB of combined stream bytes per step
    # on small-VMEM chips (v7x), ~16 MiB on 128 MiB-VMEM chips.
    target_step_bytes = (8 << 20) if vmem_cap <= (96 << 20) else (16 << 20)
    bytes_per_row = C * (pred.dtype.itemsize + tgt.dtype.itemsize)
    if block_rows is None:
        tr = target_step_bytes // max(bytes_per_row, 1)
        tr = max(8, min(8192, (tr // 8) * 8))      # cap so (TR,128) temporaries stay small
    else:
        tr = max(8, (int(block_rows) // 8) * 8)
    if tr >= R:
        # Single (or near-single) tile: keep the block's sublane dim either equal
        # to the full row count or a multiple of 8 (ragged remainder handled below).
        tr = R if (R % 8 == 0 or R < 8) else (R // 8) * 8
    num_tiles = pl.cdiv(R, tr)
    ragged = (R % tr) != 0

    # Weight operand for the chosen reduction path.
    if use_mxu:
        w_arr = jnp.zeros((C, 128), jnp.float32).at[:, 0].set(w_neg).astype(jnp.bfloat16)
        w_spec = pl.BlockSpec((C, 128), lambda i: (0, 0))
        w_vmem = C * 128 * 2
    else:
        w_arr = w_neg.reshape(1, C)
        w_spec = pl.BlockSpec((1, C), lambda i: (0, 0))
        w_vmem = 8 * C * 4                          # sublane-padded (1, C) f32

    # VMEM budget: double-buffered streams + weight + lane-padded mask + f32
    # temporaries + compiler headroom, clamped under the chip's physical VMEM.
    stream_bytes = tr * C * (pred.dtype.itemsize + tgt.dtype.itemsize)
    vmem_need = (2 * stream_bytes + 2 * w_vmem
                 + 2 * tr * 128 * 4                 # mask buffers (lane-padded)
                 + tr * C * 4 + 2 * tr * 128 * 4    # prod / rowp temporaries
                 + (8 << 20))                       # headroom for compiler scratch
    vmem_limit = int(min(max(vmem_need, 32 << 20), int(vmem_cap * 0.9)))

    kernel = functools.partial(
        _modified_kl_kernel, rows_total=R, block_rows=tr,
        compute_dtype=compute_dtype, use_mxu=use_mxu, ragged=ragged)

    partials = pl.pallas_call(
        kernel,
        out_shape=jax.ShapeDtypeStruct((num_tiles, 8, 128), jnp.float32),
        grid_spec=pltpu.PrefetchScalarGridSpec(
            num_scalar_prefetch=0,
            grid=(num_tiles,),
            in_specs=[
                pl.BlockSpec((tr, C), lambda i: (i, 0)),   # pred_log_probs
                pl.BlockSpec((tr, C), lambda i: (i, 0)),   # target_probs
                w_spec,                                    # -weight (shared, tiny)
                pl.BlockSpec((tr, 1), lambda i: (i, 0)),   # self-supervision mask
            ],
            out_specs=pl.BlockSpec((1, 8, 128), lambda i: (i, 0, 0)),
        ),
        compiler_params=pltpu.CompilerParams(
            dimension_semantics=("parallel",),   # independent per-tile partials
            vmem_limit_bytes=vmem_limit,
        ),
    )(pred, tgt, w_arr, mask)

    # Tiny final reduction over the per-tile partial sums.
    return jnp.sum(partials[:, 0, 0])


def _reference(pred_log_probs, target_probs, mask, weight):
    return jnp.sum(
        -pred_log_probs.astype(jnp.float32)
        * target_probs.astype(jnp.float32)
        * weight.reshape(1, 1, -1).astype(jnp.float32)
        * mask.astype(jnp.float32)
    )


if __name__ == "__main__":
    key = jax.random.PRNGKey(0)

    # ---- Test 1: small f32 case (single tile, f32 VPU path) ----
    k1, k2, k3, k4 = jax.random.split(key, 4)
    B, N, C = 2, 8, 32
    weight = jax.random.uniform(k1, (C,), dtype=jnp.float32)
    logits = jax.random.normal(k2, (B, N, C), dtype=jnp.float32)
    pred_log_probs = jax.nn.log_softmax(logits, axis=-1)
    target_probs = jax.nn.softmax(
        jax.random.normal(k3, (B, N, C), dtype=jnp.float32), axis=-1
    )
    self_supervision_mask = (jax.random.uniform(k4, (B, N, 1)) > 0.5).astype(jnp.float32)

    out = modified_kl(pred_log_probs, target_probs, self_supervision_mask, weight)
    out = jax.block_until_ready(out)
    ref = _reference(pred_log_probs, target_probs, self_supervision_mask, weight)
    assert jnp.allclose(out, ref, rtol=1e-5, atol=1e-5), (out, ref)

    # ---- Test 2: bf16 streams (packed product + MXU path on v6e+) ----
    # Tolerance accounts for bf16 rounding of products / weight column before
    # f32 accumulation on the bf16 MXU path.
    k5, k6, k7, k8 = jax.random.split(jax.random.PRNGKey(1), 4)
    B2, N2, C2 = 2, 650, 2048            # R = 1300 rows
    weight2 = jax.random.uniform(k5, (C2,), dtype=jnp.float32)
    plp2 = jax.nn.log_softmax(
        jax.random.normal(k6, (B2, N2, C2), dtype=jnp.float32), axis=-1
    ).astype(jnp.bfloat16)
    tp2 = jax.nn.softmax(
        jax.random.normal(k7, (B2, N2, C2), dtype=jnp.float32), axis=-1
    ).astype(jnp.bfloat16)
    mask2 = (jax.random.uniform(k8, (B2, N2, 1)) > 0.5).astype(jnp.float32)
    ref2 = _reference(plp2, tp2, mask2, weight2)

    # 2a: forced small tile -> 3-tile grid with a ragged last tile.
    out2a = jax.block_until_ready(modified_kl(plp2, tp2, mask2, weight2, block_rows=512))
    assert jnp.allclose(out2a, ref2, rtol=5e-4, atol=1e-3), (out2a, ref2)

    # 2b: default byte-based tiling (2 tiles, ragged remainder of 4 rows).
    out2b = jax.block_until_ready(modified_kl(plp2, tp2, mask2, weight2))
    assert jnp.allclose(out2b, ref2, rtol=5e-4, atol=1e-3), (out2b, ref2)

    print("KERNEL_OK")
</pallas_src>

<mosaic_0001>
module attributes {stable_mosaic.version = 11 : i64} {
  func.func @_modified_kl_kernel(%arg0: i32, %arg1: memref<16x32xf32, #tpu.memory_space<vmem>>, %arg2: memref<16x32xf32, #tpu.memory_space<vmem>>, %arg3: memref<1x32xf32, #tpu.memory_space<vmem>>, %arg4: memref<16x1xf32, #tpu.memory_space<vmem>>, %arg5: memref<1x8x128xf32, #tpu.memory_space<vmem>>) attributes {dimension_semantics = [#tpu.dimension_semantics<parallel>], iteration_bounds = array<i64: 1>, scalar_prefetch = 0 : i64, scratch_operands = 0 : i64, tpu.core_type = #tpu.core_type<tc>, window_params = [{transform_indices = @transform_0, window_bounds = array<i64: 16, 32>}, {transform_indices = @transform_1, window_bounds = array<i64: 16, 32>}, {pipeline_mode = #tpu.pipeline_mode<synchronous>, transform_indices = @transform_2, window_bounds = array<i64: 1, 32>}, {transform_indices = @transform_3, window_bounds = array<i64: 16, 1>}, {transform_indices = @transform_4, window_bounds = array<i64: 1, 8, 128>}]} {
    %c0 = arith.constant 0 : index
    %c0_0 = arith.constant 0 : index
    %0 = vector.load %arg1[%c0, %c0_0] : memref<16x32xf32, #tpu.memory_space<vmem>>, vector<16x32xf32>
    %c0_1 = arith.constant 0 : index
    %c0_2 = arith.constant 0 : index
    %1 = vector.load %arg2[%c0_1, %c0_2] : memref<16x32xf32, #tpu.memory_space<vmem>>, vector<16x32xf32>
    %2 = arith.mulf %0, %1 : vector<16x32xf32>
    %c0_3 = arith.constant 0 : index
    %c0_4 = arith.constant 0 : index
    %3 = vector.load %arg3[%c0_3, %c0_4] : memref<1x32xf32, #tpu.memory_space<vmem>>, vector<1x32xf32>
    %4 = vector.broadcast %3 : vector<1x32xf32> to vector<16x32xf32>
    %5 = arith.mulf %2, %4 : vector<16x32xf32>
    %cst = arith.constant dense<0.000000e+00> : vector<16xf32>
    %6 = vector.multi_reduction <add>, %5, %cst [1] : vector<16x32xf32> to vector<16xf32>
    %7 = vector.shape_cast %6 : vector<16xf32> to vector<16x1xf32>
    %c0_5 = arith.constant 0 : index
    %c0_6 = arith.constant 0 : index
    %8 = vector.load %arg4[%c0_5, %c0_6] : memref<16x1xf32, #tpu.memory_space<vmem>>, vector<16x1xf32>
    %9 = arith.mulf %7, %8 : vector<16x1xf32>
    %10 = vector.shape_cast %9 : vector<16x1xf32> to vector<1x16x1xf32>
    %cst_7 = arith.constant dense<0.000000e+00> : vector<1xf32>
    %11 = vector.multi_reduction <add>, %10, %cst_7 [1, 2] : vector<1x16x1xf32> to vector<1xf32>
    %12 = vector.shape_cast %11 : vector<1xf32> to vector<1x1x1xf32>
    %13 = vector.extract %12[0, 0, 0] : f32 from vector<1x1x1xf32>
    %14 = vector.broadcast %13 : f32 to vector<1x8x128xf32>
    %c0_8 = arith.constant 0 : index
    %c0_9 = arith.constant 0 : index
    %c0_10 = arith.constant 0 : index
    %15 = vector.load %arg5[%c0_8, %c0_9, %c0_10] : memref<1x8x128xf32, #tpu.memory_space<vmem>>, vector<1x8x128xf32>
    tpu.vector_store %arg5[%c0_8, %c0_9, %c0_10], %14 {strides = array<i32>} : memref<1x8x128xf32, #tpu.memory_space<vmem>>, vector<1x8x128xf32>,
    return
  }
  func.func @transform_0(%arg0: i32) -> (i32, i32) {
    %c0_i32 = arith.constant 0 : i32
    %c0_i32_0 = arith.constant 0 : i32
    return %arg0, %c0_i32 : i32, i32
  }
  func.func @transform_1(%arg0: i32) -> (i32, i32) {
    %c0_i32 = arith.constant 0 : i32
    %c0_i32_0 = arith.constant 0 : i32
    return %arg0, %c0_i32 : i32, i32
  }
  func.func @transform_2(%arg0: i32) -> (i32, i32) {
    %c0_i32 = arith.constant 0 : i32
    %c0_i32_0 = arith.constant 0 : i32
    %c0_i32_1 = arith.constant 0 : i32
    return %c0_i32, %c0_i32_0 : i32, i32
  }
  func.func @transform_3(%arg0: i32) -> (i32, i32) {
    %c0_i32 = arith.constant 0 : i32
    %c0_i32_0 = arith.constant 0 : i32
    return %arg0, %c0_i32 : i32, i32
  }
  func.func @transform_4(%arg0: i32) -> (i32, i32, i32) {
    %c0_i32 = arith.constant 0 : i32
    %c0_i32_0 = arith.constant 0 : i32
    %c0_i32_1 = arith.constant 0 : i32
    return %arg0, %c0_i32, %c0_i32_0 : i32, i32, i32
  }
}

</mosaic_0001>

<bundles_post_ra>
// kernel: tpu_custom_call.1
= control target key start
LH: loop header
LB: loop body
LE: loop exit
PB: predicated region body
PF: predicated region fallthrough
CT: control target
= control target key end

     0   :  { %9 = vsyncpa [#allocation3], 0  ;;  %s211_s0 = inlined_call_operand.vmem [shape: f32[16,32], index: 0, kind: input, shape index: {}]   ;;  %s212_s1 = inlined_call_operand.hbm [shape: f32[16,32], index: 1, kind: input, shape index: {}]   ;;  %s213_s2 = inlined_call_operand.vmem [shape: f32[1,32], index: 2, kind: input, shape index: {}]   ;;  %s214_s3 = inlined_call_operand.vmem [shape: f32[16,1], index: 3, kind: input, shape index: {}]   ;;  %s215_s4 = inlined_call_operand.hbm [shape: f32[1,8,128], index: 4, kind: output, shape index: {}]  }
   0x1   :  { %10 = vsyncpa [#allocation4], 0  ;;  %s143_s15 = smov [#allocation2]   ;;  %s95_s19 = scalar_lea.hbm %s212_s1, 256 }
   0x2   :  { %s18_s16 = sshll.u32 %s143_s15, 4  ;;  %p96_p0 = scmp.ne.s32.totalorder %s212_s1, %s95_s19  ;;  %s19_s16 = int_to_ptr.vmem [resolvable:$true] %s18_s16 }
   0x3   :  { %p99_p1 = scmp.lt.u32.totalorder %s95_s19, %s212_s1 }
   0x5   :  { %p101_p2 = pnand %p99_p1, %p96_p0 }
   0x7   :  { %104 = shalt.err (!%p101_p2)
}
   0x8   :  { %s105_s24 = scalar_lea.vmem %s19_s16, 256  ;;  %p110_p4 = scmp.lt.s32.totalorder %s19_s16, %s19_s16 }
   0x9   :  { %p106_p3 = scmp.ne.s32.totalorder %s19_s16, %s105_s24  ;;  %p111_p5 = scmp.lt.s32.totalorder %s105_s24, %s105_s24 }
   0xb   :  { %p112_p6 = por %p111_p5, %p110_p4 }
   0xd   :  { %p113_p7 = pnand %p112_p6, %p106_p3 }
   0xf   :  { %116 = shalt.err (!%p113_p7)
}
  0x10   :  { %s144_s25 = smov 128   ;;  %s145_s26 = smov 8  }
  0x11   :  { %24 = dma.hbm_to_vmem [thread:$0]  %s212_s1, 256, %s19_s16, [#allocation3], %s144_s25, %s144_s25, %s145_s26  }
  0x12   :  { %139 = dma.done.wait [#allocation3], 256  }
  0x13   :  { %140 = vsyncadd [#allocation3], 4294967040  ;;  %v32_v0 = vld [vmem:[%s211_s0] sm:$0xff]  ;;  %v33_v4 = vld [vmem:[%s211_s0 + $0x8] sm:$0xff]  ;;  %vm47_vm0 = vcmask 261120   ;;  %vm58_vm1 = vcmask 7168  }
  0x14   :  { %v34_v1 = vld [vmem:[#allocation2] sm:$0xff]  ;;  %v35_v5 = vld [vmem:[#allocation2 + $0x8] sm:$0xff]  ;;  %s146_s0 = smov [#allocation5]  }
  0x15   :  { %v88_v2 = vld [vmem:[%s213_s2] ss:$0 sm:$0xff]  ;;  %v36_v3 = vmul.f32 %v34_v1, %v32_v0  ;;  %v37_v6 = vmul.f32 %v35_v5, %v33_v4  ;;  %v55_v13 = vld [vmem:[%s214_s3 + $0x8] sm:$0xff]  ;;  %s79_s11 = sshll.u32 %s146_s0, 4  ;;  %s80_s11 = int_to_ptr.vmem [resolvable:$true] %s79_s11 }
  0x16   :  { %v54_v11 = vld [vmem:[%s214_s3] sm:$0xff]  ;;  %s117_s3 = scalar_lea.vmem %s80_s11, 128  ;;  %p122_p9 = scmp.lt.s32.totalorder %s80_s11, %s80_s11 }
  0x17   :  { %v45_v7 = vmul.f32 %v88_v2, %v36_v3  ;;  %v46_v8 = vmul.f32 %v88_v2, %v37_v6  ;;  %p118_p8 = scmp.ne.s32.totalorder %s80_s11, %s117_s3  ;;  %p123_p10 = scmp.lt.s32.totalorder %s117_s3, %s117_s3 }
  0x19   :  { %v48_v9 = vsel %vm47_vm0, %v45_v7, 0.0  ;;  %v51_v10 = vsel %vm47_vm0, %v46_v8, 0.0  ;;  %p124_p11 = por %p123_p10, %p122_p9 }
  0x1a   :  { %49 = vadd.xlane.f32.xlu0 %v48_v9 }
  0x1b   :  { %p125_p12 = pnand %p124_p11, %p118_p8 }
  0x1e   :  { %52 = vadd.xlane.f32.xlu0 %v51_v10 }
  0xa7   :  { %v50_v12 = vpop.xlane.xlu0 %49 }
  0xa8   :  { %v56_v14 = vmul.f32 %v54_v11, %v50_v12 }
  0xaa   :  { %v59_v17 = vsel %vm58_vm1, %v56_v14, 0.0 }
  0xab   :  { %v53_v15 = vpop.xlane.xlu0 %52 }
  0xac   :  { %v57_v16 = vmul.f32 %v55_v13, %v53_v15 }
  0xae   :  { %v60_v18 = vsel %vm58_vm1, %v57_v16, 0.0 }
  0xaf   :  { %v61_v19 = vadd.f32 %v60_v18, %v59_v17 }
  0xb1   :  { %62 = vadd.xlane.f32.xlu1 %v61_v19 }
 0x13e   :  { %v63_v20 = vpop.xlane.xlu1 %62 }
 0x13f   :  { %v64_v21 = vrot.slane %v63_v20, 4 }
 0x141   :  { %v65_v22 = vadd.f32 %v64_v21, %v63_v20 }
 0x143   :  { %v66_v23 = vrot.slane %v65_v22, 2 }
 0x145   :  { %v67_v24 = vadd.f32 %v66_v23, %v65_v22 }
 0x147   :  { %v68_v25 = vrot.slane %v67_v24, 1 }
 0x149   :  { %v69_v26 = vadd.f32 %v68_v25, %v67_v24 }
 0x14b   :  { %89 = vpush %v69_v26 }
 0x17c   :  { %s90_s12 = spop %89 }
 0x17d   :  { %v71_v27 = vstv %s90_s12 }
 0x17e   :  { %72 = vst [vmem:[#allocation5] sm:$0xff] %v71_v27 }
 0x17f   :  { %128 = shalt.err (!%p125_p12)
}
 0x180   :  { %s129_s15 = scalar_lea.hbm %s215_s4, 128 }
 0x181   :  { %p130_p13 = scmp.ne.s32.totalorder %s215_s4, %s129_s15  ;;  %p133_p0 = scmp.lt.u32.totalorder %s129_s15, %s215_s4 }
 0x183   :  { %p135_p1 = pnand %p133_p0, %p130_p13 }
 0x185   :  { %138 = shalt.err (!%p135_p1)
}
 0x186   :  { %82 = dma.vmem_to_hbm [thread:$0]  %s80_s11, 128, %s215_s4, [#allocation4]  }
 0x187   :  { %141 = dma.done.wait [#allocation4], 128  }
 0x188   :  { %142 = vsyncadd [#allocation4], 4294967168 }
 0x189   :  { %86 = vsyncpa [#allocation3], 1 }
 0x18a   :  { %87 = vsyncpa [#allocation4], 1 }

</bundles_post_ra>
